<compile_context>
chip_gen: v6e
topology: v6e:2x2x1
jax: 0.10.0
libtpu: 0.0.40
codegen_flags: <defaults>
</compile_context>

<pallas_src>
import numpy as np
import jax
import jax.numpy as jnp
from jax.experimental import pallas as pl
from jax.experimental.pallas import tpu as pltpu

TILE_M = 256       # rows per grid step (multiple of 8); big tile amortizes step overhead
LANE = 128         # TPU lane width; out-channel padding target (lane-dense stores)
BN_EPS = 1e-5      # nn.BatchNorm1d default eps


def _round_up(x, m):
    return ((x + m - 1) // m) * m


# ---------------------------------------------------------------------------
# Pallas kernels
# ---------------------------------------------------------------------------
def _linear_stats_kernel(x_ref, w_ref, y_ref, sum_ref, sq_ref):
    """y = x @ w (bias=False), plus per-channel sum / sum-of-squares for BN.

    The two stats outputs use a constant index_map, so they stay resident in
    VMEM across the sequential ('arbitrary') M grid axis and act as
    accumulators: init at step 0, written back to HBM once at the end."""
    y = jnp.dot(x_ref[...], w_ref[...], preferred_element_type=jnp.float32)
    y_ref[...] = y

    @pl.when(pl.program_id(0) == 0)
    def _():
        sum_ref[...] = jnp.zeros_like(sum_ref)
        sq_ref[...] = jnp.zeros_like(sq_ref)

    sum_ref[...] += jnp.sum(y, axis=0, keepdims=True)
    sq_ref[...] += jnp.sum(y * y, axis=0, keepdims=True)


def _affine_relu_kernel(y_ref, s_ref, t_ref, o_ref):
    """Per-channel y * scale + shift, then ReLU (BatchNorm affine epilogue)."""
    o_ref[...] = jnp.maximum(y_ref[...] * s_ref[...] + t_ref[...], 0.0)


def linear_bn_relu(x, w_padded, gamma_p, beta_p, n_valid_rows, eps=BN_EPS):
    """Fused Linear(bias=False) -> BatchNorm1d(training-mode stats) -> ReLU.

    x:        [M, K] float32. Rows past n_valid_rows (M padding) must be zero so
              they do not perturb the BN statistics (they cancel in both sums).
    w_padded: [K, Np] float32 with Np = round_up(out_channels, 128) — padded once
              at init so the matmul output is lane-dense.
    Returns the padded [Mp, Np] activation; the caller slices [:M, :C_out].
    """
    M, K = x.shape
    Np = w_padded.shape[1]
    Mp = _round_up(max(M, TILE_M), TILE_M)
    xp = x if Mp == M else jnp.zeros((Mp, K), jnp.float32).at[:M].set(x)

    y, ssum, ssq = pl.pallas_call(
        _linear_stats_kernel,
        out_shape=(
            jax.ShapeDtypeStruct((Mp, Np), jnp.float32),
            jax.ShapeDtypeStruct((1, Np), jnp.float32),
            jax.ShapeDtypeStruct((1, Np), jnp.float32),
        ),
        grid=(Mp // TILE_M,),
        in_specs=[
            pl.BlockSpec((TILE_M, K), lambda i: (i, 0)),   # K kept at full dim (no 128 pad)
            pl.BlockSpec((K, Np), lambda i: (0, 0)),
        ],
        out_specs=(
            pl.BlockSpec((TILE_M, Np), lambda i: (i, 0)),
            pl.BlockSpec((1, Np), lambda i: (0, 0)),       # resident stats accumulator
            pl.BlockSpec((1, Np), lambda i: (0, 0)),       # resident stats accumulator
        ),
        compiler_params=pltpu.CompilerParams(
            dimension_semantics=("arbitrary",)),           # stats accumulate over M
    )(xp, w_padded)

    # BatchNorm training-mode statistics (biased variance) over the true row
    # count; zero-padded rows contribute 0 to both sums.
    inv_n = 1.0 / float(n_valid_rows)
    mean = ssum[0] * inv_n
    var = ssq[0] * inv_n - mean * mean
    inv_std = jax.lax.rsqrt(var + eps)
    scale = (gamma_p * inv_std).reshape(1, Np)
    shift = (beta_p - mean * gamma_p * inv_std).reshape(1, Np)

    out = pl.pallas_call(
        _affine_relu_kernel,
        out_shape=jax.ShapeDtypeStruct((Mp, Np), jnp.float32),
        grid=(Mp // TILE_M,),
        in_specs=[
            pl.BlockSpec((TILE_M, Np), lambda i: (i, 0)),
            pl.BlockSpec((1, Np), lambda i: (0, 0)),
            pl.BlockSpec((1, Np), lambda i: (0, 0)),
        ],
        out_specs=pl.BlockSpec((TILE_M, Np), lambda i: (i, 0)),
        compiler_params=pltpu.CompilerParams(
            dimension_semantics=("parallel",)),
    )(y, scale, shift)
    return out


# ---------------------------------------------------------------------------
# GridPool module (params + forward)
# ---------------------------------------------------------------------------
def offset2batch_np(offset_np):
    n = int(offset_np[-1])
    return np.searchsorted(offset_np, np.arange(n), side="right").astype(np.int64)


def init_grid_pool(key, in_channels, out_channels, grid_size):
    """nn.Linear(in, out, bias=False) + BatchNorm1d(out) parameters.

    Weight is stored transposed [in, out] and lane-padded ONCE so pallas kernels
    never rebuild padded copies per call."""
    np_out = _round_up(out_channels, LANE)
    w = jax.random.normal(key, (in_channels, out_channels), jnp.float32) / np.sqrt(in_channels)
    w_padded = jnp.zeros((in_channels, np_out), jnp.float32).at[:, :out_channels].set(w)
    gamma = jnp.zeros((np_out,), jnp.float32).at[:out_channels].set(1.0)  # BN weight init
    beta = jnp.zeros((np_out,), jnp.float32)                               # BN bias init
    return dict(w_padded=w_padded, w=w, gamma=gamma, beta=beta,
                in_channels=in_channels, out_channels=out_channels,
                grid_size=grid_size)


def grid_pool_forward(params, coord, feat, offset, start=None):
    """GridPool.forward((coord, feat, offset)) -> ((coord, feat, offset), cluster)."""
    offset_np = np.asarray(offset).astype(np.int64)
    coord_np = np.asarray(coord, dtype=np.float64)
    n_points = coord_np.shape[0]
    n_batch = offset_np.shape[0]
    batch_np = offset2batch_np(offset_np)
    grid_size = params["grid_size"]

    # ---- fc -> BatchNorm -> ReLU (fused Pallas path) ----
    out_padded = linear_bn_relu(jnp.asarray(feat, jnp.float32),
                                params["w_padded"], params["gamma"],
                                params["beta"], n_valid_rows=n_points)
    feat = out_padded[:n_points, :params["out_channels"]]

    # ---- voxel clustering bookkeeping ----
    # TODO(synk): voxel_grid / torch.unique / segment_csr pointer construction
    # have data-dependent output sizes -> host-side numpy; the heavy segment
    # reductions below stay on device.
    ptr = np.concatenate([np.zeros(1, np.int64), offset_np])
    if start is None:
        start_np = np.minimum.reduceat(coord_np, ptr[:-1], axis=0)   # segment_csr 'min'
    else:
        start_np = np.asarray(start, dtype=np.float64)
    pos = coord_np - start_np[batch_np]
    v = np.floor(pos / grid_size).astype(np.int64)
    vmax = v.max(axis=0) + 1
    key = ((batch_np * vmax[0] + v[:, 0]) * vmax[1] + v[:, 1]) * vmax[2] + v[:, 2]
    _, cluster_np, counts = np.unique(key, return_inverse=True, return_counts=True)
    cluster_np = cluster_np.astype(np.int64)
    n_clusters = int(counts.shape[0])
    idx_ptr = np.concatenate([np.zeros(1, np.int64), np.cumsum(counts)])

    # ---- segment reductions (device; cluster count is a concrete int now) ----
    cluster = jnp.asarray(cluster_np, jnp.int32)
    counts_f = jnp.asarray(counts, jnp.float32)[:, None]
    new_coord = jax.ops.segment_sum(jnp.asarray(coord, jnp.float32), cluster,
                                    num_segments=n_clusters) / counts_f      # reduce='mean'
    new_feat = jax.ops.segment_max(feat, cluster, num_segments=n_clusters)   # reduce='max'

    new_batch = batch_np[idx_ptr[:-1]]            # matches reference: batch[idx_ptr[:-1]]
    new_offset = np.cumsum(np.bincount(new_batch, minlength=n_batch)).astype(np.int64)
    return (new_coord, new_feat, new_offset), cluster


# ---------------------------------------------------------------------------
# main
# ---------------------------------------------------------------------------
if __name__ == "__main__":
    B, NPB = 2, 128                 # 2 point clouds, 128 points each
    CIN, COUT = 48, 96              # GridPool(in_channels=48, out_channels=96)
    GRID_SIZE = 0.25

    root = jax.random.PRNGKey(0)
    k_coord, k_feat, k_param = jax.random.split(root, 3)
    coord = jax.random.uniform(k_coord, (B * NPB, 3), jnp.float32)
    feat = jax.random.normal(k_feat, (B * NPB, CIN), jnp.float32)
    offset = np.array([NPB, 2 * NPB], dtype=np.int64)   # cumulative, torch-style offsets

    params = init_grid_pool(k_param, CIN, COUT, GRID_SIZE)

    # --- correctness check of the fused Linear+BN+ReLU against a numpy reference ---
    out_padded = linear_bn_relu(feat, params["w_padded"], params["gamma"],
                                params["beta"], n_valid_rows=B * NPB)
    out_padded = jax.block_until_ready(out_padded)
    got = np.asarray(out_padded)[: B * NPB, :COUT]
    x_np = np.asarray(feat, np.float64)
    w_np = np.asarray(params["w"], np.float64)
    y_np = x_np @ w_np
    mean = y_np.mean(axis=0)
    var = y_np.var(axis=0)           # biased variance, as used by BN normalization
    ref = np.maximum((y_np - mean) / np.sqrt(var + BN_EPS), 0.0)
    np.testing.assert_allclose(got, ref, rtol=2e-2, atol=2e-2)

    # --- full GridPool forward ---
    (new_coord, new_feat, new_offset), cluster = grid_pool_forward(
        params, coord, feat, offset)
    new_feat = jax.block_until_ready(new_feat)
    new_coord = jax.block_until_ready(new_coord)

    n_clusters = int(new_feat.shape[0])
    assert new_coord.shape == (n_clusters, 3), new_coord.shape
    assert new_feat.shape == (n_clusters, COUT), new_feat.shape
    assert int(new_offset[-1]) == n_clusters
    assert cluster.shape == (B * NPB,)
    assert int(jnp.max(cluster)) == n_clusters - 1
    assert np.all(np.isfinite(np.asarray(new_feat)))
    assert np.all(np.isfinite(np.asarray(new_coord)))
    print("KERNEL_OK")
</pallas_src>

<mosaic_0001>
module attributes {stable_mosaic.version = 11 : i64} {
  func.func @_linear_stats_kernel(%arg0: i32, %arg1: memref<256x48xf32, #tpu.memory_space<vmem>>, %arg2: memref<48x128xf32, #tpu.memory_space<vmem>>, %arg3: memref<256x128xf32, #tpu.memory_space<vmem>>, %arg4: memref<1x128xf32, #tpu.memory_space<vmem>>, %arg5: memref<1x128xf32, #tpu.memory_space<vmem>>) attributes {dimension_semantics = [#tpu.dimension_semantics<arbitrary>], iteration_bounds = array<i64: 1>, scalar_prefetch = 0 : i64, scratch_operands = 0 : i64, tpu.core_type = #tpu.core_type<tc>, window_params = [{transform_indices = @transform_0, window_bounds = array<i64: 256, 48>}, {pipeline_mode = #tpu.pipeline_mode<synchronous>, transform_indices = @transform_1, window_bounds = array<i64: 48, 128>}, {transform_indices = @transform_2, window_bounds = array<i64: 256, 128>}, {pipeline_mode = #tpu.pipeline_mode<synchronous>, transform_indices = @transform_3, window_bounds = array<i64: 1, 128>}, {pipeline_mode = #tpu.pipeline_mode<synchronous>, transform_indices = @transform_4, window_bounds = array<i64: 1, 128>}]} {
    %c0 = arith.constant 0 : index
    %c0_0 = arith.constant 0 : index
    %0 = vector.load %arg1[%c0, %c0_0] : memref<256x48xf32, #tpu.memory_space<vmem>>, vector<256x48xf32>
    %c0_1 = arith.constant 0 : index
    %c0_2 = arith.constant 0 : index
    %1 = vector.load %arg2[%c0_1, %c0_2] : memref<48x128xf32, #tpu.memory_space<vmem>>, vector<48x128xf32>
    %cst = arith.constant dense<0.000000e+00> : vector<256x128xf32>
    %2 = tpu.matmul %0, %1, %cst {dimension_numbers = #tpu.dot_dimension_numbers<[1], [0], [0], [1], [0, 0, 1, 1], [], []>} : vector<256x48xf32>, vector<48x128xf32>, vector<256x128xf32> -> vector<256x128xf32>
    %c0_3 = arith.constant 0 : index
    %c0_4 = arith.constant 0 : index
    %3 = vector.load %arg3[%c0_3, %c0_4] : memref<256x128xf32, #tpu.memory_space<vmem>>, vector<256x128xf32>
    tpu.vector_store %arg3[%c0_3, %c0_4], %2 {strides = array<i32>} : memref<256x128xf32, #tpu.memory_space<vmem>>, vector<256x128xf32>,
    %c0_i32 = arith.constant 0 : i32
    %4 = arith.cmpi eq, %arg0, %c0_i32 : i32
    %5 = arith.extui %4 : i1 to i32
    %c0_i32_5 = arith.constant 0 : i32
    %6 = arith.cmpi ne, %5, %c0_i32_5 : i32
    scf.if %6 {
      %cst_16 = arith.constant 0.000000e+00 : f32
      %18 = vector.broadcast %cst_16 : f32 to vector<1x128xf32>
      %c0_17 = arith.constant 0 : index
      %c0_18 = arith.constant 0 : index
      %19 = vector.load %arg4[%c0_17, %c0_18] : memref<1x128xf32, #tpu.memory_space<vmem>>, vector<1x128xf32>
      tpu.vector_store %arg4[%c0_17, %c0_18], %18 {strides = array<i32>} : memref<1x128xf32, #tpu.memory_space<vmem>>, vector<1x128xf32>,
      %cst_19 = arith.constant 0.000000e+00 : f32
      %20 = vector.broadcast %cst_19 : f32 to vector<1x128xf32>
      %c0_20 = arith.constant 0 : index
      %c0_21 = arith.constant 0 : index
      %21 = vector.load %arg5[%c0_20, %c0_21] : memref<1x128xf32, #tpu.memory_space<vmem>>, vector<1x128xf32>
      tpu.vector_store %arg5[%c0_20, %c0_21], %20 {strides = array<i32>} : memref<1x128xf32, #tpu.memory_space<vmem>>, vector<1x128xf32>,
    } else {
    }
    %c0_6 = arith.constant 0 : index
    %c0_7 = arith.constant 0 : index
    %7 = vector.load %arg4[%c0_6, %c0_7] : memref<1x128xf32, #tpu.memory_space<vmem>>, vector<1x128xf32>
    %cst_8 = arith.constant dense<0.000000e+00> : vector<128xf32>
    %8 = vector.multi_reduction <add>, %2, %cst_8 [0] : vector<256x128xf32> to vector<128xf32>
    %9 = vector.shape_cast %8 : vector<128xf32> to vector<1x128xf32>
    %10 = arith.addf %7, %9 : vector<1x128xf32>
    %c0_9 = arith.constant 0 : index
    %c0_10 = arith.constant 0 : index
    %11 = vector.load %arg4[%c0_9, %c0_10] : memref<1x128xf32, #tpu.memory_space<vmem>>, vector<1x128xf32>
    tpu.vector_store %arg4[%c0_9, %c0_10], %10 {strides = array<i32>} : memref<1x128xf32, #tpu.memory_space<vmem>>, vector<1x128xf32>,
    %c0_11 = arith.constant 0 : index
    %c0_12 = arith.constant 0 : index
    %12 = vector.load %arg5[%c0_11, %c0_12] : memref<1x128xf32, #tpu.memory_space<vmem>>, vector<1x128xf32>
    %13 = arith.mulf %2, %2 : vector<256x128xf32>
    %cst_13 = arith.constant dense<0.000000e+00> : vector<128xf32>
    %14 = vector.multi_reduction <add>, %13, %cst_13 [0] : vector<256x128xf32> to vector<128xf32>
    %15 = vector.shape_cast %14 : vector<128xf32> to vector<1x128xf32>
    %16 = arith.addf %12, %15 : vector<1x128xf32>
    %c0_14 = arith.constant 0 : index
    %c0_15 = arith.constant 0 : index
    %17 = vector.load %arg5[%c0_14, %c0_15] : memref<1x128xf32, #tpu.memory_space<vmem>>, vector<1x128xf32>
    tpu.vector_store %arg5[%c0_14, %c0_15], %16 {strides = array<i32>} : memref<1x128xf32, #tpu.memory_space<vmem>>, vector<1x128xf32>,
    return
  }
  func.func @transform_0(%arg0: i32) -> (i32, i32) {
    %c0_i32 = arith.constant 0 : i32
    %c0_i32_0 = arith.constant 0 : i32
    return %arg0, %c0_i32 : i32, i32
  }
  func.func @transform_1(%arg0: i32) -> (i32, i32) {
    %c0_i32 = arith.constant 0 : i32
    %c0_i32_0 = arith.constant 0 : i32
    %c0_i32_1 = arith.constant 0 : i32
    return %c0_i32, %c0_i32_0 : i32, i32
  }
  func.func @transform_2(%arg0: i32) -> (i32, i32) {
    %c0_i32 = arith.constant 0 : i32
    %c0_i32_0 = arith.constant 0 : i32
    return %arg0, %c0_i32 : i32, i32
  }
  func.func @transform_3(%arg0: i32) -> (i32, i32) {
    %c0_i32 = arith.constant 0 : i32
    %c0_i32_0 = arith.constant 0 : i32
    %c0_i32_1 = arith.constant 0 : i32
    return %c0_i32, %c0_i32_0 : i32, i32
  }
  func.func @transform_4(%arg0: i32) -> (i32, i32) {
    %c0_i32 = arith.constant 0 : i32
    %c0_i32_0 = arith.constant 0 : i32
    %c0_i32_1 = arith.constant 0 : i32
    return %c0_i32, %c0_i32_0 : i32, i32
  }
}

</mosaic_0001>

<bundles_post_ra>
// kernel: tpu_custom_call.1
= control target key start
LH: loop header
LB: loop body
LE: loop exit
PB: predicated region body
PF: predicated region fallthrough
CT: control target
= control target key end

     0   :  { %10 = vsyncpa [#allocation3], 0  ;;  %vm54_vm0 = vcmask 392192   ;;  %s1057_s0 = inlined_call_operand.vmem [shape: f32[256,48], index: 0, kind: input, shape index: {}]   ;;  %s1058_s1 = inlined_call_operand.vmem [shape: f32[48,128], index: 1, kind: input, shape index: {}]   ;;  %s1059_s2 = inlined_call_operand.hbm [shape: f32[256,128], index: 2, kind: output, shape index: {0}]   ;;  %s1060_s3 = inlined_call_operand.hbm [shape: f32[1,128], index: 3, kind: output, shape index: {1}]   ;;  %s1061_s4 = inlined_call_operand.hbm [shape: f32[1,128], index: 4, kind: output, shape index: {2}]  }
   0x1   :  { %v53_v0 = vld [vmem:[%s1058_s1 + $0x28] sm:$0xff]  ;;  %v52_v1 = vld [vmem:[%s1058_s1 + $0x20] sm:$0xff]  ;;  %v51_v2 = vld [vmem:[%s1058_s1 + $0x18] sm:$0xff] }
   0x2   :  { %639 = vmatprep.subr.mxu0 %v53_v0  ;;  %699 = vmatprep.subr.mxu1 %v53_v0  ;;  %v16_v3 = vld [vmem:[%s1057_s0] sm:$0xff]  ;;  %v50_v4 = vld [vmem:[%s1058_s1 + $0x10] sm:$0xff]  ;;  %v49_v5 = vld [vmem:[%s1058_s1 + $0x8] sm:$0xff] }
   0x3   :  { %640 = vmatpush3.msra.mxu0 %v53_v0  ;;  %705 = vmatpush3.msra.mxu1 %v53_v0  ;;  %v48_v6 = vld [vmem:[%s1058_s1] sm:$0xff]  ;;  %v17_v7 = vld [vmem:[%s1057_s0 + $0x8] sm:$0xff]  ;;  %v18_v8 = vld [vmem:[%s1057_s0 + $0x10] sm:$0xff] }
   0x4   :  { %641 = vmatprep.subr.mxu0 %v52_v1  ;;  %651 = vmatprep.mubr.msk.f32.mxu0 %vm54_vm0, %v16_v3  ;;  %v32_v9 = vld [vmem:[%s1057_s0 + $0x80] sm:$0xff]  ;;  %v33_v10 = vld [vmem:[%s1057_s0 + $0x88] sm:$0xff] }
   0x5   :  { %642 = vmatpush3.msra.mxu0 %v52_v1  ;;  %700 = vmatprep.subr.mxu1 %v52_v1 }
   0x6   :  { %643 = vmatprep.subr.mxu0 %v51_v2  ;;  %706 = vmatpush3.msra.mxu1 %v52_v1 }
   0x7   :  { %644 = vmatpush3.msra.mxu0 %v51_v2  ;;  %701 = vmatprep.subr.mxu1 %v51_v2 }
   0x8   :  { %645 = vmatprep.subr.mxu0 %v50_v4  ;;  %707 = vmatpush3.msra.mxu1 %v51_v2 }
   0x9   :  { %646 = vmatpush3.msra.mxu0 %v50_v4  ;;  %702 = vmatprep.subr.mxu1 %v50_v4 }
   0xa   :  { %647 = vmatprep.subr.mxu0 %v49_v5  ;;  %708 = vmatpush3.msra.mxu1 %v50_v4 }
   0xb   :  { %648 = vmatpush3.msra.mxu0 %v49_v5  ;;  %703 = vmatprep.subr.mxu1 %v49_v5 }
   0xc   :  { %649 = vmatprep.subr.mxu0 %v48_v6  ;;  %709 = vmatpush3.msra.mxu1 %v49_v5 }
   0xd   :  { %650 = vmatpush3.msra.mxu0 %v48_v6  ;;  %704 = vmatprep.subr.mxu1 %v48_v6 }
   0xe   :  { %11 = vsyncpa [#allocation5], 0  ;;  %652 = vmatmul.mubr.msk.f32.vlgmr.msra.gmra.mxu0 %vm54_vm0, %v17_v7  ;;  %710 = vmatpush3.msra.mxu1 %v48_v6  ;;  %v34_v11 = vld [vmem:[%s1057_s0 + $0x90] sm:$0xff]  ;;  %v19_v12 = vld [vmem:[%s1057_s0 + $0x18] sm:$0xff]  ;;  %v781_v38 = vmov 0.0  }
   0xf   :  { %654 = vmatprep.mubr.msk.f32.mxu0 %vm54_vm0, %v18_v8  ;;  %675 = vmatprep.mubr.msk.f32.mxu1 %vm54_vm0, %v32_v9  ;;  %v20_v13 = vld [vmem:[%s1057_s0 + $0x20] sm:$0xff]  ;;  %v35_v14 = vld [vmem:[%s1057_s0 + $0x98] sm:$0xff]  ;;  %v21_v16 = vld [vmem:[%s1057_s0 + $0x28] sm:$0xff]  ;;  %412 = vst [vmem:[#allocation4] sm:$0x1] %v781_v38 }
  0x10   :  { %676 = vmatmul.mubr.msk.f32.vlgmr.msra.gmra.mxu1 %vm54_vm0, %v33_v10  ;;  %v36_v15 = vld [vmem:[%s1057_s0 + $0xa0] sm:$0xff]  ;;  %v22_v17 = vld [vmem:[%s1057_s0 + $0x30] sm:$0xff]  ;;  %v37_v18 = vld [vmem:[%s1057_s0 + $0xa8] sm:$0xff]  ;;  %413 = vst [vmem:[#allocation6] sm:$0x1] %v781_v38 }
  0x11   :  { %678 = vmatprep.mubr.msk.f32.mxu1 %vm54_vm0, %v34_v11  ;;  %v38_v19 = vld [vmem:[%s1057_s0 + $0xb0] sm:$0xff]  ;;  %v23_v20 = vld [vmem:[%s1057_s0 + $0x38] sm:$0xff]  ;;  %v24_v21 = vld [vmem:[%s1057_s0 + $0x40] sm:$0xff] }
  0x12   :  { %655 = vmatmul.mubr.msk.f32.gmra.mxu0 %vm54_vm0, %v19_v12  ;;  %v39_v22 = vld [vmem:[%s1057_s0 + $0xb8] sm:$0xff]  ;;  %v40_v23 = vld [vmem:[%s1057_s0 + $0xc0] sm:$0xff]  ;;  %v25_v24 = vld [vmem:[%s1057_s0 + $0x48] sm:$0xff] }
  0x13   :  { %657 = vmatprep.mubr.msk.f32.mxu0 %vm54_vm0, %v20_v13  ;;  %v26_v25 = vld [vmem:[%s1057_s0 + $0x50] sm:$0xff]  ;;  %v41_v26 = vld [vmem:[%s1057_s0 + $0xc8] sm:$0xff]  ;;  %v27_v28 = vld [vmem:[%s1057_s0 + $0x58] sm:$0xff] }
  0x14   :  { %679 = vmatmul.mubr.msk.f32.gmra.mxu1 %vm54_vm0, %v35_v14  ;;  %v42_v27 = vld [vmem:[%s1057_s0 + $0xd0] sm:$0xff]  ;;  %v28_v29 = vld [vmem:[%s1057_s0 + $0x60] sm:$0xff]  ;;  %v43_v30 = vld [vmem:[%s1057_s0 + $0xd8] sm:$0xff] }
  0x15   :  { %681 = vmatprep.mubr.msk.f32.mxu1 %vm54_vm0, %v36_v15  ;;  %v44_v31 = vld [vmem:[%s1057_s0 + $0xe0] sm:$0xff]  ;;  %v29_v32 = vld [vmem:[%s1057_s0 + $0x68] sm:$0xff]  ;;  %v30_v33 = vld [vmem:[%s1057_s0 + $0x70] sm:$0xff] }
  0x16   :  { %658 = vmatmul.mubr.msk.f32.gmra.mxu0 %vm54_vm0, %v21_v16  ;;  %v45_v34 = vld [vmem:[%s1057_s0 + $0xe8] sm:$0xff]  ;;  %v46_v35 = vld [vmem:[%s1057_s0 + $0xf0] sm:$0xff]  ;;  %v31_v36 = vld [vmem:[%s1057_s0 + $0x78] sm:$0xff] }
  0x17   :  { %660 = vmatprep.mubr.msk.f32.mxu0 %vm54_vm0, %v22_v17  ;;  %v47_v37 = vld [vmem:[%s1057_s0 + $0xf8] sm:$0xff]  ;;  %s782_s0 = smov [#allocation2]  }
  0x18   :  { %682 = vmatmul.mubr.msk.f32.gmra.mxu1 %vm54_vm0, %v37_v18  ;;  %s531_s10 = sshll.u32 %s782_s0, 4  ;;  %s532_s10 = int_to_ptr.vmem [resolvable:$true] %s531_s10 }
  0x19   :  { %684 = vmatprep.mubr.msk.f32.mxu1 %vm54_vm0, %v38_v19  ;;  %s717_s11 = scalar_lea.vmem %s532_s10, 4096  ;;  %p722_p1 = scmp.lt.s32.totalorder %s532_s10, %s532_s10 }
  0x1a   :  { %661 = vmatmul.mubr.msk.f32.gmra.mxu0 %vm54_vm0, %v23_v20  ;;  %p718_p0 = scmp.ne.s32.totalorder %s532_s10, %s717_s11  ;;  %p723_p2 = scmp.lt.s32.totalorder %s717_s11, %s717_s11 }
  0x1b   :  { %663 = vmatprep.mubr.msk.f32.mxu0 %vm54_vm0, %v24_v21 }
  0x1c   :  { %685 = vmatmul.mubr.msk.f32.gmra.mxu1 %vm54_vm0, %v39_v22  ;;  %p724_p3 = por %p723_p2, %p722_p1 }
  0x1d   :  { %687 = vmatprep.mubr.msk.f32.mxu1 %vm54_vm0, %v40_v23 }
  0x1e   :  { %664 = vmatmul.mubr.msk.f32.gmra.mxu0 %vm54_vm0, %v25_v24  ;;  %p725_p4 = pnand %p724_p3, %p718_p0 }
  0x1f   :  { %666 = vmatprep.mubr.msk.f32.mxu0 %vm54_vm0, %v26_v25 }
  0x20   :  { %688 = vmatmul.mubr.msk.f32.gmra.mxu1 %vm54_vm0, %v41_v26 }
  0x21   :  { %690 = vmatprep.mubr.msk.f32.mxu1 %vm54_vm0, %v42_v27 }
  0x22   :  { %667 = vmatmul.mubr.msk.f32.gmra.mxu0 %vm54_vm0, %v27_v28 }
  0x23   :  { %669 = vmatprep.mubr.msk.f32.mxu0 %vm54_vm0, %v28_v29 }
  0x24   :  { %691 = vmatmul.mubr.msk.f32.gmra.mxu1 %vm54_vm0, %v43_v30 }
  0x25   :  { %693 = vmatprep.mubr.msk.f32.mxu1 %vm54_vm0, %v44_v31 }
  0x26   :  { %670 = vmatmul.mubr.msk.f32.gmra.mxu0 %vm54_vm0, %v29_v32 }
  0x27   :  { %672 = vmatprep.mubr.msk.f32.mxu0 %vm54_vm0, %v30_v33 }
  0x28   :  { %694 = vmatmul.mubr.msk.f32.gmra.mxu1 %vm54_vm0, %v45_v34 }
  0x29   :  { %696 = vmatprep.mubr.msk.f32.mxu1 %vm54_vm0, %v46_v35 }
  0x2a   :  { %673 = vmatmul.mubr.msk.f32.gmra.mxu0 %vm54_vm0, %v31_v36 }
  0x2c   :  { %697 = vmatmul.mubr.msk.f32.gmra.mxu1 %vm54_vm0, %v47_v37 }
  0xce   :  { %v653_v39 = vpop.f32.mrf.mxu0 }
  0xcf   :  { %377 = vst [vmem:[#allocation2 + $0x8] sm:$0xff] %v653_v39  ;;  %v456_v45 = vmul.f32 %v653_v39, %v653_v39 }
  0xd0   :  { %v217_v40 = vpop.f32.mrf.mxu0  ;;  %v958_v41 = vpop.f32.mrf.mxu1 }
  0xd1   :  { %376 = vst [vmem:[#allocation2] sm:$0xff] %v217_v40  ;;  %v455_v42 = vmul.f32 %v217_v40, %v217_v40  ;;  %393 = vst [vmem:[#allocation2 + $0x88] sm:$0xff] %v958_v41  ;;  %v415_v46 = vadd.f32 %v653_v39, %v217_v40 }
  0xd2   :  { %v656_v43 = vpop.f32.mrf.mxu0  ;;  %v961_v44 = vpop.f32.mrf.mxu1 }
  0xd3   :  { %379 = vst [vmem:[#allocation2 + $0x18] sm:$0xff] %v656_v43  ;;  %392 = vst [vmem:[#allocation2 + $0x80] sm:$0xff] %v961_v44  ;;  %v487_v49 = vadd.f32 %v456_v45, %v455_v42  ;;  %v458_v54 = vmul.f32 %v656_v43, %v656_v43 }
  0xd4   :  { %v227_v47 = vpop.f32.mrf.mxu0  ;;  %v964_v48 = vpop.f32.mrf.mxu1 }
  0xd5   :  { %378 = vst [vmem:[#allocation2 + $0x10] sm:$0xff] %v227_v47  ;;  %v416_v50 = vadd.f32 %v415_v46, %v227_v47  ;;  %v457_v51 = vmul.f32 %v227_v47, %v227_v47  ;;  %395 = vst [vmem:[#allocation2 + $0x98] sm:$0xff] %v964_v48 }
  0xd6   :  { %v659_v52 = vpop.f32.mrf.mxu0  ;;  %v967_v53 = vpop.f32.mrf.mxu1 }
  0xd7   :  { %v488_v55 = vadd.f32 %v487_v49, %v457_v51  ;;  %381 = vst [vmem:[#allocation2 + $0x28] sm:$0xff] %v659_v52  ;;  %v417_v56 = vadd.f32 %v656_v43, %v416_v50  ;;  %394 = vst [vmem:[#allocation2 + $0x90] sm:$0xff] %v967_v53  ;;  %v460_v0 = vmul.f32 %v659_v52, %v659_v52 }
  0xd8   :  { %v237_v57 = vpop.f32.mrf.mxu0  ;;  %v970_v58 = vpop.f32.mrf.mxu1 }
  0xd9   :  { %380 = vst [vmem:[#allocation2 + $0x20] sm:$0xff] %v237_v57  ;;  %v418_v59 = vadd.f32 %v417_v56, %v237_v57  ;;  %v459_v60 = vmul.f32 %v237_v57, %v237_v57  ;;  %v489_v61 = vadd.f32 %v488_v55, %v458_v54  ;;  %397 = vst [vmem:[#allocation2 + $0xa8] sm:$0xff] %v970_v58 }
  0xda   :  { %v662_v62 = vpop.f32.mrf.mxu0  ;;  %v973_v63 = vpop.f32.mrf.mxu1 }
  0xdb   :  { %v490_v1 = vadd.f32 %v489_v61, %v459_v60  ;;  %383 = vst [vmem:[#allocation2 + $0x38] sm:$0xff] %v662_v62  ;;  %v419_v2 = vadd.f32 %v659_v52, %v418_v59  ;;  %396 = vst [vmem:[#allocation2 + $0xa0] sm:$0xff] %v973_v63  ;;  %v462_v10 = vmul.f32 %v662_v62, %v662_v62 }
  0xdc   :  { %v247_v3 = vpop.f32.mrf.mxu0  ;;  %v976_v4 = vpop.f32.mrf.mxu1 }
  0xdd   :  { %382 = vst [vmem:[#allocation2 + $0x30] sm:$0xff] %v247_v3  ;;  %v420_v5 = vadd.f32 %v419_v2, %v247_v3  ;;  %v461_v6 = vmul.f32 %v247_v3, %v247_v3  ;;  %v491_v7 = vadd.f32 %v490_v1, %v460_v0  ;;  %399 = vst [vmem:[#allocation2 + $0xb8] sm:$0xff] %v976_v4 }
  0xde   :  { %v665_v8 = vpop.f32.mrf.mxu0  ;;  %v979_v9 = vpop.f32.mrf.mxu1 }
  0xdf   :  { %v492_v11 = vadd.f32 %v491_v7, %v461_v6  ;;  %385 = vst [vmem:[#allocation2 + $0x48] sm:$0xff] %v665_v8  ;;  %v421_v12 = vadd.f32 %v662_v62, %v420_v5  ;;  %398 = vst [vmem:[#allocation2 + $0xb0] sm:$0xff] %v979_v9  ;;  %v464_v20 = vmul.f32 %v665_v8, %v665_v8 }
  0xe0   :  { %v257_v13 = vpop.f32.mrf.mxu0  ;;  %v982_v14 = vpop.f32.mrf.mxu1 }
  0xe1   :  { %384 = vst [vmem:[#allocation2 + $0x40] sm:$0xff] %v257_v13  ;;  %v422_v15 = vadd.f32 %v421_v12, %v257_v13  ;;  %v463_v16 = vmul.f32 %v257_v13, %v257_v13  ;;  %v493_v17 = vadd.f32 %v492_v11, %v462_v10  ;;  %401 = vst [vmem:[#allocation2 + $0xc8] sm:$0xff] %v982_v14 }
  0xe2   :  { %v668_v18 = vpop.f32.mrf.mxu0  ;;  %v985_v19 = vpop.f32.mrf.mxu1 }
  0xe3   :  { %v494_v21 = vadd.f32 %v493_v17, %v463_v16  ;;  %387 = vst [vmem:[#allocation2 + $0x58] sm:$0xff] %v668_v18  ;;  %v423_v22 = vadd.f32 %v665_v8, %v422_v15  ;;  %400 = vst [vmem:[#allocation2 + $0xc0] sm:$0xff] %v985_v19  ;;  %v466_v30 = vmul.f32 %v668_v18, %v668_v18 }
  0xe4   :  { %v267_v23 = vpop.f32.mrf.mxu0  ;;  %v988_v24 = vpop.f32.mrf.mxu1 }
  0xe5   :  { %386 = vst [vmem:[#allocation2 + $0x50] sm:$0xff] %v267_v23  ;;  %v424_v25 = vadd.f32 %v423_v22, %v267_v23  ;;  %v465_v26 = vmul.f32 %v267_v23, %v267_v23  ;;  %v495_v27 = vadd.f32 %v494_v21, %v464_v20  ;;  %403 = vst [vmem:[#allocation2 + $0xd8] sm:$0xff] %v988_v24 }
  0xe6   :  { %v671_v28 = vpop.f32.mrf.mxu0  ;;  %v991_v29 = vpop.f32.mrf.mxu1 }
  0xe7   :  { %v496_v31 = vadd.f32 %v495_v27, %v465_v26  ;;  %389 = vst [vmem:[#allocation2 + $0x68] sm:$0xff] %v671_v28  ;;  %v425_v32 = vadd.f32 %v668_v18, %v424_v25  ;;  %402 = vst [vmem:[#allocation2 + $0xd0] sm:$0xff] %v991_v29  ;;  %v468_v40 = vmul.f32 %v671_v28, %v671_v28 }
  0xe8   :  { %v277_v33 = vpop.f32.mrf.mxu0  ;;  %v994_v34 = vpop.f32.mrf.mxu1 }
  0xe9   :  { %388 = vst [vmem:[#allocation2 + $0x60] sm:$0xff] %v277_v33  ;;  %v426_v35 = vadd.f32 %v425_v32, %v277_v33  ;;  %v467_v36 = vmul.f32 %v277_v33, %v277_v33  ;;  %v497_v37 = vadd.f32 %v496_v31, %v466_v30  ;;  %405 = vst [vmem:[#allocation2 + $0xe8] sm:$0xff] %v994_v34 }
  0xea   :  { %v674_v38 = vpop.f32.mrf.mxu0  ;;  %v997_v39 = vpop.f32.mrf.mxu1 }
  0xeb   :  { %v498_v42 = vadd.f32 %v497_v37, %v467_v36  ;;  %391 = vst [vmem:[#allocation2 + $0x78] sm:$0xff] %v674_v38  ;;  %v427_v43 = vadd.f32 %v671_v28, %v426_v35  ;;  %404 = vst [vmem:[#allocation2 + $0xe0] sm:$0xff] %v997_v39  ;;  %v470_v52 = vmul.f32 %v674_v38, %v674_v38 }
  0xec   :  { %v287_v45 = vpop.f32.mrf.mxu0  ;;  %v1000_v46 = vpop.f32.mrf.mxu1 }
  0xed   :  { %390 = vst [vmem:[#allocation2 + $0x70] sm:$0xff] %v287_v45  ;;  %v428_v47 = vadd.f32 %v427_v43, %v287_v45  ;;  %v469_v49 = vmul.f32 %v287_v45, %v287_v45  ;;  %v499_v50 = vadd.f32 %v498_v42, %v468_v40  ;;  %407 = vst [vmem:[#allocation2 + $0xf8] sm:$0xff] %v1000_v46 }
  0xee   :  { %v367_v51 = vpop.f32.mrf.mxu1 }
  0xef   :  { %v429_v54 = vadd.f32 %v674_v38, %v428_v47  ;;  %v500_v55 = vadd.f32 %v499_v50, %v469_v49  ;;  %406 = vst [vmem:[#allocation2 + $0xf0] sm:$0xff] %v367_v51 }
  0xf0   :  { %728 = shalt.err (!%p725_p4)
}
  0xf1   :  { %s783_s12 = smov 128   ;;  %s784_s13 = smov 8   ;;  %v501_v56 = vadd.f32 %v500_v55, %v470_v52  ;;  %v430_v57 = vadd.f32 %v429_v54, %v961_v44  ;;  %v471_v59 = vmul.f32 %v961_v44, %v961_v44  ;;  %v472_v60 = vmul.f32 %v958_v41, %v958_v41  ;;  %v454_v54 = vld [vmem:[#allocation6] sm:$0x1] }
  0xf2   :  { %537 = dma.vmem_to_hbm [thread:$0]  %s532_s10, 4096, %s1059_s2, [#allocation3], %s783_s12, %s783_s12, %s784_s13   ;;  %v473_v1 = vmul.f32 %v967_v53, %v967_v53  ;;  %v474_v3 = vmul.f32 %v964_v48, %v964_v48  ;;  %v475_v7 = vmul.f32 %v973_v63, %v973_v63  ;;  %v477_v12 = vmul.f32 %v979_v9, %v979_v9 }
  0xf3   :  { %v502_v61 = vadd.f32 %v501_v56, %v471_v59  ;;  %v431_v62 = vadd.f32 %v958_v41, %v430_v57  ;;  %v476_v41 = vmul.f32 %v970_v58, %v970_v58  ;;  %v479_v17 = vmul.f32 %v985_v19, %v985_v19  ;;  %s785_s2 = smov [#allocation4]   ;;  %s786_s17 = smov [#allocation6]  }
  0xf4   :  { %v481_v22 = vmul.f32 %v991_v29, %v991_v29  ;;  %v483_v27 = vmul.f32 %v997_v39, %v997_v39  ;;  %v485_v32 = vmul.f32 %v367_v51, %v367_v51  ;;  %v486_v35 = vmul.f32 %v1000_v46, %v1000_v46  ;;  %s544_s16 = sshll.u32 %s785_s2, 4  ;;  %s554_s18 = sshll.u32 %s786_s17, 4  ;;  %s545_s16 = int_to_ptr.vmem [resolvable:$true] %s544_s16  ;;  %s555_s18 = int_to_ptr.vmem [resolvable:$true] %s554_s18 }
  0xf5   :  { %v432_v0 = vadd.f32 %v431_v62, %v967_v53  ;;  %v503_v2 = vadd.f32 %v502_v61, %v472_v60  ;;  %s737_s19 = scalar_lea.vmem %s545_s16, 16  ;;  %s741_s20 = scalar_lea.vmem %s545_s16, 32 }
  0xf6   :  { %p738_p5 = scmp.ne.s32.totalorder %s545_s16, %s737_s19  ;;  %p742_p6 = scmp.lt.s32.totalorder %s545_s16, %s545_s16 }
  0xf7   :  { %v504_v5 = vadd.f32 %v503_v2, %v473_v1  ;;  %v433_v6 = vadd.f32 %v964_v48, %v432_v0  ;;  %v478_v48 = vmul.f32 %v976_v4, %v976_v4  ;;  %p743_p7 = scmp.lt.s32.totalorder %s741_s20, %s737_s19 }
  0xf9   :  { %v434_v44 = vadd.f32 %v433_v6, %v973_v63  ;;  %v505_v8 = vadd.f32 %v504_v5, %v474_v3  ;;  %p744_p8 = por %p743_p7, %p742_p6 }
  0xfb   :  { %v506_v10 = vadd.f32 %v505_v8, %v475_v7  ;;  %v435_v11 = vadd.f32 %v970_v58, %v434_v44  ;;  %v480_v58 = vmul.f32 %v982_v14, %v982_v14  ;;  %p745_p9 = pnand %p744_p8, %p738_p5 }
  0xfd   :  { %v436_v53 = vadd.f32 %v435_v11, %v979_v9  ;;  %v507_v13 = vadd.f32 %v506_v10, %v476_v41 }
  0xff   :  { %v508_v15 = vadd.f32 %v507_v13, %v477_v12  ;;  %v437_v16 = vadd.f32 %v976_v4, %v436_v53  ;;  %v482_v4 = vmul.f32 %v988_v24, %v988_v24 }
 0x101   :  { %v438_v63 = vadd.f32 %v437_v16, %v985_v19  ;;  %v509_v18 = vadd.f32 %v508_v15, %v478_v48 }
 0x103   :  { %v510_v20 = vadd.f32 %v509_v18, %v479_v17  ;;  %v439_v21 = vadd.f32 %v982_v14, %v438_v63  ;;  %v484_v14 = vmul.f32 %v994_v34, %v994_v34 }
 0x105   :  { %v440_v9 = vadd.f32 %v439_v21, %v991_v29  ;;  %v511_v23 = vadd.f32 %v510_v20, %v480_v58 }
 0x107   :  { %v512_v25 = vadd.f32 %v511_v23, %v481_v22  ;;  %v441_v26 = vadd.f32 %v988_v24, %v440_v9 }
 0x109   :  { %v442_v19 = vadd.f32 %v441_v26, %v997_v39  ;;  %v513_v28 = vadd.f32 %v512_v25, %v482_v4 }
 0x10b   :  { %v514_v30 = vadd.f32 %v513_v28, %v483_v27  ;;  %v443_v31 = vadd.f32 %v994_v34, %v442_v19  ;;  %v414_v34 = vld [vmem:[#allocation4] sm:$0x1] }
 0x10d   :  { %v444_v29 = vadd.f32 %v443_v31, %v367_v51  ;;  %v515_v33 = vadd.f32 %v514_v30, %v484_v14 }
 0x10f   :  { %v445_v24 = vadd.f32 %v1000_v46, %v444_v29  ;;  %v516_v36 = vadd.f32 %v515_v33, %v485_v32 }
 0x111   :  { %v446_v37 = vrot.slane %v445_v24, 4  ;;  %v517_v38 = vadd.f32 %v516_v36, %v486_v35 }
 0x113   :  { %v447_v40 = vadd.f32 %v446_v37, %v445_v24  ;;  %v518_v39 = vrot.slane %v517_v38, 4 }
 0x115   :  { %v448_v42 = vrot.slane %v447_v40, 2  ;;  %v519_v43 = vadd.f32 %v518_v39, %v517_v38 }
 0x117   :  { %v449_v45 = vadd.f32 %v448_v42, %v447_v40  ;;  %v520_v47 = vrot.slane %v519_v43, 2 }
 0x119   :  { %v450_v49 = vrot.slane %v449_v45, 1  ;;  %v521_v50 = vadd.f32 %v520_v47, %v519_v43 }
 0x11b   :  { %v451_v51 = vadd.f32 %v450_v49, %v449_v45  ;;  %v522_v52 = vrot.slane %v521_v50, 1 }
 0x11d   :  { %v452_v46 = vadd.f32 %v451_v51, %v414_v34  ;;  %v523_v55 = vadd.f32 %v522_v52, %v521_v50 }
 0x11f   :  { %453 = vst [vmem:[#allocation4] sm:$0x1] %v452_v46  ;;  %v524_v56 = vadd.f32 %v523_v55, %v454_v54 }
 0x120   :  { %748 = shalt.err (!%p745_p9)
}
 0x121   :  { %547 = dma.vmem_to_hbm [thread:$0]  %s545_s16, 16, %s1060_s3, [#allocation5]   ;;  %525 = vst [vmem:[#allocation6] sm:$0x1] %v524_v56 }
 0x122   :  { %s757_s23 = scalar_lea.vmem %s555_s18, 16  ;;  %s761_s24 = scalar_lea.vmem %s555_s18, 32 }
 0x123   :  { %p758_p10 = scmp.ne.s32.totalorder %s555_s18, %s757_s23  ;;  %p762_p11 = scmp.lt.s32.totalorder %s555_s18, %s555_s18 }
 0x124   :  { %p763_p12 = scmp.lt.s32.totalorder %s761_s24, %s757_s23 }
 0x126   :  { %p764_p13 = por %p763_p12, %p762_p11 }
 0x128   :  { %p765_p0 = pnand %p764_p13, %p758_p10 }
 0x12a   :  { %768 = shalt.err (!%p765_p0)
}
 0x12b   :  { %557 = dma.vmem_to_hbm [thread:$0]  %s555_s18, 16, %s1061_s4, [#allocation5]  }
 0x12c   :  { %777 = dma.done.wait [#allocation3], 4096  }
 0x12d   :  { %778 = vsyncadd [#allocation3], 4294963200 }
 0x12e   :  { %779 = dma.done.wait [#allocation5], 32  }
 0x12f   :  { %780 = vsyncadd [#allocation5], 4294967264 }
 0x130   :  { %567 = vsyncpa [#allocation3], 1 }
 0x131   :  { %568 = vsyncpa [#allocation5], 1 }

</bundles_post_ra>
